<compile_context>
chip_gen: v7x
topology: tpu7x:2x2x1
jax: 0.10.0
libtpu: 0.0.40
codegen_flags: <defaults>
</compile_context>

<pallas_src>
import functools
import math

import jax
import jax.numpy as jnp
from jax.experimental import pallas as pl
from jax.experimental.pallas import tpu as pltpu


def _round_up(x, m):
    return ((x + m - 1) // m) * m


def _erf(x, *, approx_recip=False):
    # Abramowitz & Stegun 7.1.26, |err| <= 1.5e-7.  Elementwise-only ops.
    a1, a2, a3, a4, a5 = (0.254829592, -0.284496736, 1.421413741,
                          -1.453152027, 1.061405429)
    p = 0.3275911
    sign = jnp.where(x < 0.0, -1.0, 1.0)
    ax = jnp.abs(x)
    denom = 1.0 + p * ax
    if approx_recip:
        # EUP vrcp (separate bundle slot) -- used only on the bf16 path where
        # downstream accuracy is bf16 anyway.
        t = pl.reciprocal(denom, approx=True)
    else:
        t = 1.0 / denom
    poly = ((((a5 * t + a4) * t + a3) * t + a2) * t + a1) * t
    return sign * (1.0 - poly * jnp.exp(-ax * ax))


def _gelu(x, *, approx_recip=False):
    # Exact (erf-based) GELU, matching the PyTorch module's gelu().
    return x * 0.5 * (1.0 + _erf(x * (1.0 / math.sqrt(2.0)),
                                 approx_recip=approx_recip))


def ffn_kernel(x_ref, w1_ref, b1_ref, w2_ref, b2_ref, o_ref, acc_ref, *,
               tk, resident, approx_recip):
    # x_ref:  (tm, d_model)           input dtype (cast to weight dtype here)
    # w1_ref: (d_model, tk | d_ff_p)  compute dtype
    # b1_ref: (1, tk | d_ff_p)        f32
    # w2_ref: (tk | d_ff_p, d_model)  compute dtype
    # b2_ref: (1, d_model)            f32
    # o_ref:  (tm, d_model)           out dtype
    # acc_ref:(tm, d_model)           f32 accumulator, resident across k axis
    k = pl.program_id(1)

    @pl.when(k == 0)
    def _():
        acc_ref[...] = jnp.zeros_like(acc_ref)

    if resident:
        off = pl.multiple_of(k * tk, tk)          # tk is a multiple of 256
        w1 = w1_ref[:, pl.ds(off, tk)]
        b1 = b1_ref[:, pl.ds(off, tk)]
        w2 = w2_ref[pl.ds(off, tk), :]
    else:
        w1 = w1_ref[...]
        b1 = b1_ref[...]
        w2 = w2_ref[...]

    # Cast x in-kernel (saves a full HBM round trip over x in the wrapper).
    x = x_ref[...].astype(w1.dtype)
    # First matmul on the MXU with f32 accumulation.
    h = jnp.dot(x, w1, preferred_element_type=jnp.float32)
    # Bias + exact GELU in f32 on the VPU (+ EUP for exp / approx reciprocal).
    h = _gelu(h + b1, approx_recip=approx_recip)
    # Second matmul: activation downcast to weight dtype, f32 accumulation.
    acc_ref[...] += jnp.dot(h.astype(w2.dtype), w2,
                            preferred_element_type=jnp.float32)

    @pl.when(k == pl.num_programs(1) - 1)
    def _():
        o_ref[...] = (acc_ref[...] + b2_ref[...]).astype(o_ref.dtype)


def _vmem_capacity_bytes():
    try:
        return int(pltpu.get_tpu_info().vmem_capacity_bytes)
    except Exception:
        return 64 * 1024 * 1024  # conservative: v7x per-TensorCore VMEM


def _vmem_need_bytes(tm, tk, d_model, d_ff_p, x_bytes, c_bytes, o_bytes,
                     resident):
    x_tile = tm * d_model * x_bytes
    out_tile = tm * d_model * o_bytes
    b2 = d_model * 4
    acc = tm * d_model * 4
    if resident:
        w = (2 * d_model * d_ff_p) * c_bytes + d_ff_p * 4
    else:
        w = (2 * d_model * tk) * c_bytes + tk * 4
    # Double-buffering for every BlockSpec operand (resident weights counted
    # twice as well, conservatively); the f32 accumulator is single-buffered.
    return int(1.15 * (2 * (x_tile + out_tile + b2 + w) + acc)) + (1 << 20)


def _plan_tiles(M, d_model, d_ff_p, x_dtype, compute_dtype, out_dtype, tm_hint):
    x_bytes = jnp.dtype(x_dtype).itemsize
    c_bytes = jnp.dtype(compute_dtype).itemsize
    o_bytes = jnp.dtype(out_dtype).itemsize

    capacity = _vmem_capacity_bytes()
    budget = int(capacity * 0.75)  # headroom (v7x: ~48 MiB of 64 MiB)

    tm = min(tm_hint, _round_up(M, 8))
    # Megacore (v7x has 2 TCs): ensure the "parallel" M axis has >= 2 tiles.
    if _round_up(M, tm) // tm < 2 and tm > 8:
        tm = max(8, _round_up(tm // 2, 8))

    def choose_tk(tm_):
        # Largest 256-multiple dividing d_ff_p whose f32 intermediate stays
        # small; keeps tk >= 512 whenever d_ff allows (hides acc RMW).
        for cand in (2048, 1024, 512, 256):
            if d_ff_p % cand == 0 and tm_ * cand * 4 <= (4 << 20):
                return cand
        return 256

    tk = choose_tk(tm)
    # Resident weights (single DMA for the whole grid) when they fit easily.
    resident = (2 * (2 * d_model * d_ff_p) * c_bytes) <= capacity // 3

    def need(res, tm_, tk_):
        return _vmem_need_bytes(tm_, tk_, d_model, d_ff_p, x_bytes, c_bytes,
                                o_bytes, res)

    # Shrink until we fit: drop residency, then halve tm, then reduce tk.
    while need(resident, tm, tk) > budget:
        if resident:
            resident = False
        elif tm > 64:
            tm = max(64, _round_up(tm // 2, 8))
        elif tk > 256:
            tk = 256
        else:
            break

    vmem_limit = int(min(int(capacity * 0.9),
                         max(need(resident, tm, tk), 32 * 1024 * 1024)))
    return tm, tk, resident, vmem_limit


def prepare_ffn_params(w1, b1, w2, b2, *, compute_dtype=jnp.bfloat16):
    """Cast + pad the weights ONCE (hoist out of the per-call hot path).

    w1: (d_model, d_ff), b1: (d_ff,), w2: (d_ff, d_model), b2: (d_model,).
    d_ff is zero-padded to a multiple of 256 (gelu(0) == 0, so hidden-dim
    padding is exact; 256 matches the v6e/v7x MXU width).
    """
    d_model, d_ff = w1.shape
    d_ff_p = _round_up(d_ff, 256)
    pad = d_ff_p - d_ff
    w1c = w1.astype(compute_dtype)
    w2c = w2.astype(compute_dtype)
    b1f = b1.astype(jnp.float32)
    if pad:
        w1c = jnp.pad(w1c, ((0, 0), (0, pad)))
        b1f = jnp.pad(b1f, ((0, pad),))
        w2c = jnp.pad(w2c, ((0, pad), (0, 0)))
    b1f = b1f.reshape(1, d_ff_p)
    b2f = b2.astype(jnp.float32).reshape(1, d_model)
    return w1c, b1f, w2c, b2f


def ffn_apply(x, params, *, tm=512, out_dtype=None):
    """x: (..., d_model); params from prepare_ffn_params."""
    w1c, b1f, w2c, b2f = params
    d_model, d_ff_p = w1c.shape
    compute_dtype = w1c.dtype
    out_dtype = x.dtype if out_dtype is None else out_dtype

    lead = x.shape[:-1]
    M = math.prod(lead)
    x2d = x.reshape(M, d_model)

    tm_eff, tk_eff, resident, vmem_limit = _plan_tiles(
        M, d_model, d_ff_p, x.dtype, compute_dtype, out_dtype, tm)

    M_p = _round_up(M, tm_eff)
    if M_p != M:
        x2d = jnp.pad(x2d, ((0, M_p - M), (0, 0)))

    grid = (M_p // tm_eff, d_ff_p // tk_eff)

    if resident:
        w1_spec = pl.BlockSpec((d_model, d_ff_p), lambda i, k: (0, 0))
        b1_spec = pl.BlockSpec((1, d_ff_p), lambda i, k: (0, 0))
        w2_spec = pl.BlockSpec((d_ff_p, d_model), lambda i, k: (0, 0))
    else:
        w1_spec = pl.BlockSpec((d_model, tk_eff), lambda i, k: (0, k))
        b1_spec = pl.BlockSpec((1, tk_eff), lambda i, k: (0, k))
        w2_spec = pl.BlockSpec((tk_eff, d_model), lambda i, k: (k, 0))

    kernel = functools.partial(
        ffn_kernel, tk=tk_eff, resident=resident,
        approx_recip=(jnp.dtype(compute_dtype) == jnp.dtype(jnp.bfloat16)))

    out2d = pl.pallas_call(
        kernel,
        out_shape=jax.ShapeDtypeStruct((M_p, d_model), out_dtype),
        grid_spec=pltpu.PrefetchScalarGridSpec(
            num_scalar_prefetch=0,
            grid=grid,
            in_specs=[
                pl.BlockSpec((tm_eff, d_model), lambda i, k: (i, 0)),  # x rows
                w1_spec,                                               # W1
                b1_spec,                                               # b1
                w2_spec,                                               # W2
                pl.BlockSpec((1, d_model), lambda i, k: (0, 0)),       # b2
            ],
            out_specs=pl.BlockSpec((tm_eff, d_model), lambda i, k: (i, 0)),
            scratch_shapes=[pltpu.VMEM((tm_eff, d_model), jnp.float32)],
        ),
        compiler_params=pltpu.CompilerParams(
            dimension_semantics=("parallel", "arbitrary"),
            vmem_limit_bytes=vmem_limit),
    )(x2d, w1c, b1f, w2c, b2f)

    return out2d[:M].reshape(*lead, d_model)


def position_wise_feed_forward(x, w1, b1, w2, b2, *, tm=512,
                               compute_dtype=jnp.bfloat16, out_dtype=None):
    """Convenience wrapper.  For repeated (inference) calls, call
    prepare_ffn_params once and reuse its result with ffn_apply so the weight
    casts/pads are not re-executed on every call."""
    params = prepare_ffn_params(w1, b1, w2, b2, compute_dtype=compute_dtype)
    return ffn_apply(x, params, tm=tm, out_dtype=out_dtype)


def init_params(key, d_model, d_ff, dtype=jnp.float32):
    # Mimics nn.Linear default init: uniform(+/- 1/sqrt(fan_in)).
    k1, k2, k3, k4 = jax.random.split(key, 4)
    bound1 = 1.0 / (d_model ** 0.5)
    bound2 = 1.0 / (d_ff ** 0.5)
    # PyTorch Linear weight is (out, in); stored transposed (in, out) here.
    w1 = jax.random.uniform(k1, (d_model, d_ff), dtype, -bound1, bound1)
    b1 = jax.random.uniform(k2, (d_ff,), dtype, -bound1, bound1)
    w2 = jax.random.uniform(k3, (d_ff, d_model), dtype, -bound2, bound2)
    b2 = jax.random.uniform(k4, (d_model,), dtype, -bound2, bound2)
    return w1, b1, w2, b2


def _reference(x, w1, b1, w2, b2):
    h = x @ w1 + b1
    h = h * 0.5 * (1.0 + jax.scipy.special.erf(h / math.sqrt(2.0)))
    return h @ w2 + b2


if __name__ == "__main__":
    key = jax.random.PRNGKey(0)
    batch, seq, hidden = 2, 8, 128          # lane-aligned hidden size
    d_ff = 4 * hidden

    kx, kp = jax.random.split(key)
    x = jax.random.normal(kx, (batch, seq, hidden), jnp.float32)
    w1, b1, w2, b2 = init_params(kp, hidden, d_ff)

    # bf16-matmul fast path (weights prepared once, reused).
    params_bf16 = prepare_ffn_params(w1, b1, w2, b2, compute_dtype=jnp.bfloat16)
    out = jax.block_until_ready(ffn_apply(x, params_bf16))
    ref = _reference(x, w1, b1, w2, b2)
    assert out.shape == (batch, seq, hidden)
    assert jnp.allclose(out, ref, atol=2e-2, rtol=2e-2)

    # Unaligned M (tail padding) with full f32 compute for a tight check.
    x2 = jax.random.normal(kx, (3, 5, hidden), jnp.float32)
    out2 = jax.block_until_ready(
        position_wise_feed_forward(x2, w1, b1, w2, b2,
                                   compute_dtype=jnp.float32))
    ref2 = _reference(x2, w1, b1, w2, b2)
    assert jnp.allclose(out2, ref2, atol=1e-4, rtol=1e-4)

    print("KERNEL_OK")
</pallas_src>

<mosaic_0001>
module attributes {stable_mosaic.version = 11 : i64} {
  func.func @ffn_kernel(%arg0: i32, %arg1: i32, %arg2: memref<8x128xf32, #tpu.memory_space<vmem>>, %arg3: memref<128x512xbf16, #tpu.memory_space<vmem>>, %arg4: memref<1x512xf32, #tpu.memory_space<vmem>>, %arg5: memref<512x128xbf16, #tpu.memory_space<vmem>>, %arg6: memref<1x128xf32, #tpu.memory_space<vmem>>, %arg7: memref<8x128xf32, #tpu.memory_space<vmem>>, %arg8: memref<8x128xf32, #tpu.memory_space<vmem>>) attributes {dimension_semantics = [#tpu.dimension_semantics<parallel>, #tpu.dimension_semantics<arbitrary>], iteration_bounds = array<i64: 2, 1>, scalar_prefetch = 0 : i64, scratch_operands = 1 : i64, tpu.core_type = #tpu.core_type<tc>, window_params = [{transform_indices = @transform_0, window_bounds = array<i64: 8, 128>}, {pipeline_mode = #tpu.pipeline_mode<synchronous>, transform_indices = @transform_1, window_bounds = array<i64: 128, 512>}, {pipeline_mode = #tpu.pipeline_mode<synchronous>, transform_indices = @transform_2, window_bounds = array<i64: 1, 512>}, {pipeline_mode = #tpu.pipeline_mode<synchronous>, transform_indices = @transform_3, window_bounds = array<i64: 512, 128>}, {pipeline_mode = #tpu.pipeline_mode<synchronous>, transform_indices = @transform_4, window_bounds = array<i64: 1, 128>}, {transform_indices = @transform_5, window_bounds = array<i64: 8, 128>}]} {
    %c0_i32 = arith.constant 0 : i32
    %0 = arith.cmpi eq, %arg1, %c0_i32 : i32
    %1 = arith.extui %0 : i1 to i32
    %c0_i32_0 = arith.constant 0 : i32
    %2 = arith.cmpi ne, %1, %c0_i32_0 : i32
    scf.if %2 {
      %cst_27 = arith.constant 0.000000e+00 : f32
      %64 = vector.broadcast %cst_27 : f32 to vector<8x128xf32>
      %c0_28 = arith.constant 0 : index
      %c0_29 = arith.constant 0 : index
      %65 = vector.load %arg8[%c0_28, %c0_29] : memref<8x128xf32, #tpu.memory_space<vmem>>, vector<8x128xf32>
      tpu.vector_store %arg8[%c0_28, %c0_29], %64 {strides = array<i32>} : memref<8x128xf32, #tpu.memory_space<vmem>>, vector<8x128xf32>,
    } else {
    }
    %c512_i32 = arith.constant 512 : i32
    %3 = arith.muli %arg1, %c512_i32 : i32
    %4 = tpu.assume_multiple %3, 512 : i32
    %c0 = arith.constant 0 : index
    %5 = arith.index_cast %4 : i32 to index
    %6 = vector.load %arg3[%c0, %5] : memref<128x512xbf16, #tpu.memory_space<vmem>>, vector<128x512xbf16>
    %c0_1 = arith.constant 0 : index
    %7 = arith.index_cast %4 : i32 to index
    %8 = vector.load %arg4[%c0_1, %7] : memref<1x512xf32, #tpu.memory_space<vmem>>, vector<1x512xf32>
    %9 = arith.index_cast %4 : i32 to index
    %c0_2 = arith.constant 0 : index
    %10 = vector.load %arg5[%9, %c0_2] : memref<512x128xbf16, #tpu.memory_space<vmem>>, vector<512x128xbf16>
    %c0_3 = arith.constant 0 : index
    %c0_4 = arith.constant 0 : index
    %11 = vector.load %arg2[%c0_3, %c0_4] : memref<8x128xf32, #tpu.memory_space<vmem>>, vector<8x128xf32>
    %12 = arith.truncf %11 : vector<8x128xf32> to vector<8x128xbf16>
    %cst = arith.constant dense<0.000000e+00> : vector<8x512xf32>
    %13 = tpu.matmul %12, %6, %cst {dimension_numbers = #tpu.dot_dimension_numbers<[1], [0], [0], [1], [0, 0, 1, 1], [], []>} : vector<8x128xbf16>, vector<128x512xbf16>, vector<8x512xf32> -> vector<8x512xf32>
    %14 = vector.broadcast %8 : vector<1x512xf32> to vector<8x512xf32>
    %15 = arith.addf %13, %14 : vector<8x512xf32>
    %cst_5 = arith.constant 5.000000e-01 : f32
    %16 = vector.broadcast %cst_5 : f32 to vector<8x512xf32>
    %17 = arith.mulf %15, %16 : vector<8x512xf32>
    %cst_6 = arith.constant 0.707106769 : f32
    %18 = vector.broadcast %cst_6 : f32 to vector<8x512xf32>
    %19 = arith.mulf %15, %18 : vector<8x512xf32>
    %cst_7 = arith.constant 0.000000e+00 : f32
    %20 = vector.broadcast %cst_7 : f32 to vector<8x512xf32>
    %21 = arith.cmpf olt, %19, %20 : vector<8x512xf32>
    %cst_8 = arith.constant -1.000000e+00 : f32
    %cst_9 = arith.constant 1.000000e+00 : f32
    %22 = vector.broadcast %cst_8 : f32 to vector<8x512xf32>
    %23 = vector.broadcast %cst_9 : f32 to vector<8x512xf32>
    %24 = arith.select %21, %22, %23 : vector<8x512xi1>, vector<8x512xf32>
    %25 = math.absf %19 : vector<8x512xf32>
    %cst_10 = arith.constant 0.327591091 : f32
    %26 = vector.broadcast %cst_10 : f32 to vector<8x512xf32>
    %27 = arith.mulf %26, %25 : vector<8x512xf32>
    %cst_11 = arith.constant 1.000000e+00 : f32
    %28 = vector.broadcast %cst_11 : f32 to vector<8x512xf32>
    %29 = arith.addf %28, %27 : vector<8x512xf32>
    %30 = tpu.reciprocal %29 {approx = true} : vector<8x512xf32> -> vector<8x512xf32>
    %cst_12 = arith.constant 1.06140542 : f32
    %31 = vector.broadcast %cst_12 : f32 to vector<8x512xf32>
    %32 = arith.mulf %31, %30 : vector<8x512xf32>
    %cst_13 = arith.constant -1.45315206 : f32
    %33 = vector.broadcast %cst_13 : f32 to vector<8x512xf32>
    %34 = arith.addf %32, %33 : vector<8x512xf32>
    %35 = arith.mulf %34, %30 : vector<8x512xf32>
    %cst_14 = arith.constant 1.42141378 : f32
    %36 = vector.broadcast %cst_14 : f32 to vector<8x512xf32>
    %37 = arith.addf %35, %36 : vector<8x512xf32>
    %38 = arith.mulf %37, %30 : vector<8x512xf32>
    %cst_15 = arith.constant -0.284496725 : f32
    %39 = vector.broadcast %cst_15 : f32 to vector<8x512xf32>
    %40 = arith.addf %38, %39 : vector<8x512xf32>
    %41 = arith.mulf %40, %30 : vector<8x512xf32>
    %cst_16 = arith.constant 0.254829586 : f32
    %42 = vector.broadcast %cst_16 : f32 to vector<8x512xf32>
    %43 = arith.addf %41, %42 : vector<8x512xf32>
    %44 = arith.mulf %43, %30 : vector<8x512xf32>
    %cst_17 = arith.constant 0.000000e+00 : f32
    %45 = vector.broadcast %cst_17 : f32 to vector<8x512xf32>
    %46 = arith.subf %45, %25 : vector<8x512xf32>
    %47 = arith.mulf %46, %25 : vector<8x512xf32>
    %48 = math.exp %47 : vector<8x512xf32>
    %49 = arith.mulf %44, %48 : vector<8x512xf32>
    %cst_18 = arith.constant 1.000000e+00 : f32
    %50 = vector.broadcast %cst_18 : f32 to vector<8x512xf32>
    %51 = arith.subf %50, %49 : vector<8x512xf32>
    %52 = arith.mulf %24, %51 : vector<8x512xf32>
    %cst_19 = arith.constant 1.000000e+00 : f32
    %53 = vector.broadcast %cst_19 : f32 to vector<8x512xf32>
    %54 = arith.addf %53, %52 : vector<8x512xf32>
    %55 = arith.mulf %17, %54 : vector<8x512xf32>
    %c0_20 = arith.constant 0 : index
    %c0_21 = arith.constant 0 : index
    %56 = vector.load %arg8[%c0_20, %c0_21] : memref<8x128xf32, #tpu.memory_space<vmem>>, vector<8x128xf32>
    %57 = arith.truncf %55 : vector<8x512xf32> to vector<8x512xbf16>
    %cst_22 = arith.constant dense<0.000000e+00> : vector<8x128xf32>
    %58 = tpu.matmul %57, %10, %cst_22 {dimension_numbers = #tpu.dot_dimension_numbers<[1], [0], [0], [1], [0, 0, 1, 1], [], []>} : vector<8x512xbf16>, vector<512x128xbf16>, vector<8x128xf32> -> vector<8x128xf32>
    %59 = arith.addf %56, %58 : vector<8x128xf32>
    %c0_23 = arith.constant 0 : index
    %c0_24 = arith.constant 0 : index
    %60 = vector.load %arg8[%c0_23, %c0_24] : memref<8x128xf32, #tpu.memory_space<vmem>>, vector<8x128xf32>
    tpu.vector_store %arg8[%c0_23, %c0_24], %59 {strides = array<i32>} : memref<8x128xf32, #tpu.memory_space<vmem>>, vector<8x128xf32>,
    %c0_i32_25 = arith.constant 0 : i32
    %61 = arith.cmpi eq, %arg1, %c0_i32_25 : i32
    %62 = arith.extui %61 : i1 to i32
    %c0_i32_26 = arith.constant 0 : i32
    %63 = arith.cmpi ne, %62, %c0_i32_26 : i32
    scf.if %63 {
      %c0_27 = arith.constant 0 : index
      %c0_28 = arith.constant 0 : index
      %64 = vector.load %arg8[%c0_27, %c0_28] : memref<8x128xf32, #tpu.memory_space<vmem>>, vector<8x128xf32>
      %c0_29 = arith.constant 0 : index
      %c0_30 = arith.constant 0 : index
      %65 = vector.load %arg6[%c0_29, %c0_30] : memref<1x128xf32, #tpu.memory_space<vmem>>, vector<1x128xf32>
      %66 = vector.broadcast %65 : vector<1x128xf32> to vector<8x128xf32>
      %67 = arith.addf %64, %66 : vector<8x128xf32>
      %c0_31 = arith.constant 0 : index
      %c0_32 = arith.constant 0 : index
      %68 = vector.load %arg7[%c0_31, %c0_32] : memref<8x128xf32, #tpu.memory_space<vmem>>, vector<8x128xf32>
      tpu.vector_store %arg7[%c0_31, %c0_32], %67 {strides = array<i32>} : memref<8x128xf32, #tpu.memory_space<vmem>>, vector<8x128xf32>,
    } else {
    }
    return
  }
  func.func @transform_0(%arg0: i32, %arg1: i32) -> (i32, i32) {
    %c0_i32 = arith.constant 0 : i32
    %c0_i32_0 = arith.constant 0 : i32
    return %arg0, %c0_i32 : i32, i32
  }
  func.func @transform_1(%arg0: i32, %arg1: i32) -> (i32, i32) {
    %c0_i32 = arith.constant 0 : i32
    %c0_i32_0 = arith.constant 0 : i32
    %c0_i32_1 = arith.constant 0 : i32
    return %c0_i32, %c0_i32_0 : i32, i32
  }
  func.func @transform_2(%arg0: i32, %arg1: i32) -> (i32, i32) {
    %c0_i32 = arith.constant 0 : i32
    %c0_i32_0 = arith.constant 0 : i32
    %c0_i32_1 = arith.constant 0 : i32
    return %c0_i32, %c0_i32_0 : i32, i32
  }
  func.func @transform_3(%arg0: i32, %arg1: i32) -> (i32, i32) {
    %c0_i32 = arith.constant 0 : i32
    %c0_i32_0 = arith.constant 0 : i32
    %c0_i32_1 = arith.constant 0 : i32
    return %c0_i32, %c0_i32_0 : i32, i32
  }
  func.func @transform_4(%arg0: i32, %arg1: i32) -> (i32, i32) {
    %c0_i32 = arith.constant 0 : i32
    %c0_i32_0 = arith.constant 0 : i32
    %c0_i32_1 = arith.constant 0 : i32
    return %c0_i32, %c0_i32_0 : i32, i32
  }
  func.func @transform_5(%arg0: i32, %arg1: i32) -> (i32, i32) {
    %c0_i32 = arith.constant 0 : i32
    %c0_i32_0 = arith.constant 0 : i32
    return %arg0, %c0_i32 : i32, i32
  }
}

</mosaic_0001>

<bundles_post_ra>
// kernel: tpu_custom_call.1
= control target key start
LH: loop header
LB: loop body
LE: loop exit
PB: predicated region body
PF: predicated region fallthrough
CT: control target
= control target key end

     0   :  { %10 = vsyncpa [#allocation4], 0  ;;  %s1991_s0 = inlined_call_operand.hbm [shape: f32[16,128], index: 0, kind: input, shape index: {}]   ;;  %s1992_s1 = inlined_call_operand.hbm [shape: bf16[128,512], index: 1, kind: input, shape index: {}]   ;;  %s1993_s2 = inlined_call_operand.vmem [shape: f32[1,512], index: 2, kind: input, shape index: {}]   ;;  %s1994_s3 = inlined_call_operand.hbm [shape: bf16[512,128], index: 3, kind: input, shape index: {}]   ;;  %s1995_s4 = inlined_call_operand.vmem [shape: f32[1,128], index: 4, kind: input, shape index: {}]   ;;  %s1996_s5 = inlined_call_operand.hbm [shape: f32[16,128], index: 5, kind: output, shape index: {}]  }
   0x1   :  { %12 = vsyncpa [#allocation4 + $0x1], 0 }
   0x2   :  { %13 = vsyncpa [#allocation7], 0 }
   0x3   :  { %14 = vsyncpa [#allocation5], 0 }
   0x4   :  { %16 = vsyncpa [#allocation5 + $0x1], 0  ;;  %s1696_s18 = smov 0   ;;  %s1698_s19 = smov 0  }
   0x5   :  { %s1700_s20 = smov 0   ;;  %s1702_s21 = smov 0  }
   0x6   :  { %s1704_s22 = smov 0   ;;  %s1706_s23 = smov 0  }
   0x7 LB: > { %s1171_s24 = sadd.s32 4294967295, %s1654_s23   ;;  %s1172_s25 = sadd.s32 4294967294, %s1654_s23   ;;  %s1654_s23 = sphi %s1706_s23, %s22_s23   ;;  %s1650_s22 = sphi %s1704_s22, %s2018_s22   ;;  %s1646_s21 = sphi %s1702_s21, %s2017_s21   ;;  %s1642_s20 = sphi %s1700_s20, %s2016_s20   ;;  %s1638_s19 = sphi %s1698_s19, %s2015_s19   ;;  %s1634_s18 = sphi %s1696_s18, %s2014_s18  }
   0x8   : > { %p54_p0 = scmp.ne.s32.totalorder %s1638_s19, %s1634_s18  ;;  %p1730_p1 = scmp.eq.s32.totalorder %s1171_s24, 0 }
   0x9   : > { %p1734_p2 = scmp.eq.s32.totalorder %s1171_s24, 1  ;;  %p168_p3 = scmp.eq.s32.totalorder %s1172_s25, 1 }
   0xa   : > { %s2001_s26 = scalar_select %p1730_p1, 1, 0 }
   0xb   : > { %p1740_p4 = por %p1730_p1, %p54_p0  ;;  %p1173_p5 = scmp.ge.s32.totalorder %s1654_s23, 1 }
   0xc   : > { %p1745_p6 = por %p168_p3, %p54_p0  ;;  %p175_p7 = scmp.lt.s32.totalorder %s1654_s23, 3 }
   0xd   : > { %s2003_s28 = scalar_select %p1740_p4, 1, 0 }
   0xe   : > { %s2004_s29 = scalar_select %p1745_p6, 1, 0 }
   0xf   : > { %p1750_p8 = pnand %p1173_p5, %p175_p7  ;;  %s1656_s6 = smov [#allocation6]  }
  0x10   : > { %s187_s7 = sshll.u32 %s1656_s6, 4  ;;  %s1657_s9 = smov [#allocation8]   ;;  %s1754_s7 = int_to_ptr.vmem [resolvable:$true] %s187_s7 }
  0x11   : > { %p1309_p9 = pneg %p1750_p8  ;;  %s203_s10 = sshll.u32 %s1657_s9, 4  ;;  %s1765_s10 = int_to_ptr.vmem [resolvable:$true] %s203_s10 }
  0x12   : > { %s1482_s13 = scalar_lea.hbm %s1992_s1, 4096 }
  0x13   : > { %p1761_p11 = pnand %p1309_p9, %p1730_p1  ;;  %p1483_p12 = scmp.ne.s32.totalorder %s1992_s1, %s1482_s13 }
  0x14   : > { %p1489_p5 = scmp.lt.u32.totalorder %s1482_s13, %s1992_s1 }
  0x15   : > { %p1484_p13 = pneg %p1761_p11 }
  0x17   : > { %p1485_p0 = pnand %p1484_p13, %p1483_p12 }
  0x19   : > { %p1486_p3 = pneg %p1485_p0 }
  0x1b   : > { %p1491_p7 = pnand %p1489_p5, %p1486_p3 }
  0x1d   : > { %1494 = shalt.err (!%p1491_p7)
}
  0x1e   : > { %s1495_s24 = scalar_lea.vmem %s1754_s7, 4096  ;;  %p1503_p1 = scmp.lt.s32.totalorder %s1754_s7, %s1754_s7 }
  0x1f   : > { %p1496_p9 = scmp.ne.s32.totalorder %s1754_s7, %s1495_s24  ;;  %p1504_p12 = scmp.lt.s32.totalorder %s1495_s24, %s1495_s24 }
  0x21   : > { %p1498_p10 = pnand %p1496_p9, %p1484_p13  ;;  %p1505_p0 = por %p1504_p12, %p1503_p1 }
  0x23   : > { %p1499_p6 = pneg %p1498_p10 }
  0x25   : > { %p1506_p4 = pnand %p1505_p0, %p1499_p6 }
  0x27   : > { %1509 = shalt.err (!%p1506_p4)
}
  0x28   : > { %s1658_s25 = smov 256   ;;  %s1659_s6 = smov 16  }
  0x29   : > { %1312 = dma.hbm_to_vmem [thread:$0]  (!%p1761_p11), %s1992_s1, 4096, %s1754_s7, [#allocation7], %s1658_s25, %s1658_s25, %s1659_s6  }
  0x2a   : > { %s1510_s14 = scalar_lea.hbm %s1994_s3, 4096 }
  0x2b   : > { %p1511_p1 = scmp.ne.s32.totalorder %s1994_s3, %s1510_s14  ;;  %p1517_p10 = scmp.lt.u32.totalorder %s1510_s14, %s1994_s3 }
  0x2d   : > { %p1513_p4 = pnand %p1511_p1, %p1484_p13 }
  0x2f   : > { %p1514_p6 = pneg %p1513_p4 }
  0x31   : > { %p1519_p3 = pnand %p1517_p10, %p1514_p6 }
  0x33   : > { %1522 = shalt.err (!%p1519_p3)
}
  0x34   : > { %s1523_s7 = scalar_lea.vmem %s1765_s10, 4096  ;;  %p1531_p12 = scmp.lt.s32.totalorder %s1765_s10, %s1765_s10 }
  0x35   : > { %p1524_p5 = scmp.ne.s32.totalorder %s1765_s10, %s1523_s7  ;;  %p1532_p0 = scmp.lt.s32.totalorder %s1523_s7, %s1523_s7 }
  0x37   : > { %p1526_p7 = pnand %p1524_p5, %p1484_p13  ;;  %p1533_p1 = por %p1532_p0, %p1531_p12 }
  0x39   : > { %p1527_p9 = pneg %p1526_p7 }
  0x3b   : > { %p1534_p4 = pnand %p1533_p1, %p1527_p9 }
  0x3d   : > { %1537 = shalt.err (!%p1534_p4)
}
  0x3e   : > { %s1660_s25 = smov 64   ;;  %s1661_s6 = smov 4  }
  0x3f   : > { %1315 = dma.hbm_to_vmem [thread:$0]  (!%p1761_p11), %s1994_s3, 4096, %s1765_s10, [#allocation7], %s1660_s25, %s1660_s25, %s1661_s6  }
  0x40   : > { %s34_s12 = sadd.s32 1, %s1650_s22  ;;  %s41_s13 = sadd.s32 1, %s1642_s20 }
  0x41   : > { %p36_p13 = scmp.ge.s32.totalorder %s34_s12, 2  ;;  %p48_p6 = scmp.ne.s32.totalorder %s1642_s20, %s1638_s19 }
  0x42   : > { %p49_p10 = scmp.eq.s32.totalorder %s1654_s23, 0  ;;  %p1326_p3 = scmp.lt.s32.totalorder %s1654_s23, 2 }
  0x43   : > { %s2020_s12 = smov (%p36_p13, %s34_s12), 0  ;;  %p1829_p7 = por %p1734_p2, %p48_p6 }
  0x44   : > { %p50_p5 = por %p49_p10, %p48_p6  ;;  %s38_s8 = ssub.s32 %s1650_s22, %s2020_s12 }
  0x45   : > { %s2007_s14 = scalar_select %p1829_p7, 1, 0 }
  0x46   : > { %s220_s15 = sand.u32 1, %s1642_s20   ;;  %p39_p9 = scmp.eq.s32.totalorder %s38_s8, 0 }
  0x47   : > { %s1177_s10 = sshll.u32 %s220_s15, 3  ;;  %s1178_s16 = sshll.u32 %s1650_s22, 7 }
  0x48   : > { %s1838_s17 = scalar_select %p39_p9, %s1642_s20, %s41_s13  }
  0x49   : > { %s1843_s25 = scalar_lea.hbm %s1991_s0, %s1178_s16  ;;  %s224_s27 = scalar_lea.vmem [#allocation3], %s1177_s10 }
  0x4a   : > { %s231_s6 = sshll.u32 %s224_s27, 4  ;;  %p1847_p2 = pnand %p1326_p3, %p50_p5  ;;  %s1851_s6 = int_to_ptr.vmem [resolvable:$true] %s231_s6 }
  0x4b   : > { %s221_s11 = scalar_lea.sflag [#allocation4], %s220_s15  ;;  %s1538_s13 = scalar_lea.hbm %s1843_s25, 128 }
  0x4c   : > { %p1539_p11 = scmp.ne.s32.totalorder %s1843_s25, %s1538_s13  ;;  %p1540_p12 = pneg %p1847_p2 }
  0x4d   : > { %s1543_s16 = scalar_lea.hbm %s1991_s0, 256  ;;  %p1544_p4 = scmp.lt.u32.totalorder %s1843_s25, %s1991_s0 }
  0x4e   : > { %p1541_p0 = pnand %p1540_p12, %p1539_p11  ;;  %p1545_p13 = scmp.lt.u32.totalorder %s1543_s16, %s1538_s13 }
  0x4f   : > { %p1547_p10 = scmp.lt.u32.totalorder %s1538_s13, %s1843_s25 }
  0x50   : > { %p1542_p1 = pneg %p1541_p0  ;;  %p1546_p6 = por %p1545_p13, %p1544_p4 }
  0x52   : > { %p1548_p3 = por %p1547_p10, %p1546_p6 }
  0x54   : > { %p1549_p5 = pnand %p1548_p3, %p1542_p1 }
  0x56   : > { %1552 = shalt.err (!%p1549_p5)
}
  0x57   : > { %s1553_s15 = scalar_lea.vmem %s1851_s6, 128  ;;  %s1662_s27 = smov [#allocation3]  }
  0x58   : > { %p1554_p9 = scmp.ne.s32.totalorder %s1851_s6, %s1553_s15  ;;  %s1558_s8 = sshll.u32 %s1662_s27, 4  ;;  %s1559_s8 = int_to_ptr.vmem [resolvable:$false] %s1558_s8 }
  0x59   : > { %s1560_s10 = scalar_lea.vmem %s1559_s8, 256  ;;  %p1561_p7 = scmp.lt.s32.totalorder %s1851_s6, %s1559_s8 }
  0x5a   : > { %p1556_p11 = pnand %p1554_p9, %p1540_p12  ;;  %p1562_p4 = scmp.lt.s32.totalorder %s1560_s10, %s1553_s15 }
  0x5c   : > { %p1557_p0 = pneg %p1556_p11  ;;  %p1563_p13 = por %p1562_p4, %p1561_p7 }
  0x5e   : > { %p1564_p6 = pnand %p1563_p13, %p1557_p0 }
  0x60   : > { %1567 = shalt.err (!%p1564_p6)
}
  0x61   : > { %1319 = dma.hbm_to_vmem [thread:$0]  (!%p1847_p2), %s1843_s25, 128, %s1851_s6, %s221_s11  }
  0x62   : > { %240 = sbr.rel (%p1750_p8) target bundleno = 643 (0x283), region = 40  ;;  %s1881_s13 = sand.u32 (!%p1750_p8), 1, %s1638_s19  }
  0x63   : > { %s1180_s16 = sshll.u32 (!%p1750_p8), %s1881_s13, 3  ;;  %s243_s24 = scalar_lea.sflag (!%p1750_p8), [#allocation4], %s1881_s13 }
  0x64   : > { %s1887_s7 = scalar_lea.vmem (!%p1750_p8), [#allocation3], %s1180_s16  ;;  %p2009_p7 = scmp.ne.s32.totalorder (!%p1750_p8), %s2003_s28, 0 }
  0x69   : > { %1621 = dma.done.wait (%p2009_p7), %s243_s24, 128  }
  0x6a   : > { %1623 = vsyncadd (%p2009_p7), %s243_s24, 4294967168  ;;  %p2010_p2 = scmp.ne.s32.totalorder %s2001_s26, 0 }
  0x6c   : > { %1625 = dma.done.wait (%p2010_p2), [#allocation7], 8192  }
  0x6d   : > { %1627 = vsyncadd (%p2010_p2), [#allocation7], 4294959104  ;;  %v1663_v0 = vmov 0   ;;  %v1386_v1 = vld [vmem:[#allocation6 + $0x4] ss:$16 sps:$4 sm:$0xff]   ;;  %v1438_v39 = vld [vmem:[#allocation8 + $0x48] sm:$0xff]  }
  0x6e   : > { %609 = vmatprep.mubr.bf16.mxu0 %v1663_v0  ;;  %650 = vmatprep.mubr.bf16.mxu1 %v1663_v0  ;;  %v1388_v2 = vld [vmem:[#allocation6 + $0xc] ss:$16 sps:$4 sm:$0xff]   ;;  %v1390_v3 = vld [vmem:[#allocation6] ss:$16 sps:$4 sm:$0xff]   ;;  %v1391_v4 = vld [vmem:[#allocation6 + $0x8] ss:$16 sps:$4 sm:$0xff]  }
  0x6f   : > { %577 = vmatprep.subr.bf16.mxu0 %v1386_v1  ;;  %618 = vmatprep.subr.bf16.mxu1 %v1388_v2  ;;  %v1392_v5 = vld [vmem:[#allocation6 + $0x24] ss:$16 sps:$4 sm:$0xff]   ;;  %v1394_v6 = vld [vmem:[#allocation6 + $0x2c] ss:$16 sps:$4 sm:$0xff]   ;;  %v1396_v7 = vld [vmem:[#allocation6 + $0x20] ss:$16 sps:$4 sm:$0xff]  }
  0x70   : > { %578 = vmatpush1.bf16.msra.mxu0 %v1390_v3  ;;  %619 = vmatpush1.bf16.msra.mxu1 %v1391_v4  ;;  %v1397_v8 = vld [vmem:[#allocation6 + $0x28] ss:$16 sps:$4 sm:$0xff]   ;;  %v1398_v9 = vld [vmem:[#allocation6 + $0x44] ss:$16 sps:$4 sm:$0xff]   ;;  %v1400_v10 = vld [vmem:[#allocation6 + $0x4c] ss:$16 sps:$4 sm:$0xff]   ;;  %v397_v3 = vlaneseq }
  0x71   : > { %579 = vmatprep.subr.bf16.mxu0 %v1392_v5  ;;  %620 = vmatprep.subr.bf16.mxu1 %v1394_v6  ;;  %v1402_v11 = vld [vmem:[#allocation6 + $0x40] ss:$16 sps:$4 sm:$0xff]   ;;  %v1403_v12 = vld [vmem:[#allocation6 + $0x48] ss:$16 sps:$4 sm:$0xff]   ;;  %v1404_v13 = vld [vmem:[#allocation6 + $0x64] ss:$16 sps:$4 sm:$0xff]  }
  0x72   : > { %v1406_v14 = vld [vmem:[#allocation6 + $0x6c] ss:$16 sps:$4 sm:$0xff]   ;;  %v1408_v15 = vld [vmem:[#allocation6 + $0x60] ss:$16 sps:$4 sm:$0xff]   ;;  %v1409_v16 = vld [vmem:[#allocation6 + $0x68] ss:$16 sps:$4 sm:$0xff]  }
  0x73   : > { %v1410_v17 = vld [vmem:[#allocation6 + $0x84] ss:$16 sps:$4 sm:$0xff]   ;;  %v1412_v18 = vld [vmem:[#allocation6 + $0x8c] ss:$16 sps:$4 sm:$0xff]   ;;  %v1414_v19 = vld [vmem:[#allocation6 + $0x80] ss:$16 sps:$4 sm:$0xff]  }
  0x74   : > { %580 = vmatpush1.bf16.msra.mxu0 %v1396_v7  ;;  %621 = vmatpush1.bf16.msra.mxu1 %v1397_v8  ;;  %v1415_v20 = vld [vmem:[#allocation6 + $0x88] ss:$16 sps:$4 sm:$0xff]   ;;  %v1416_v21 = vld [vmem:[#allocation6 + $0xa4] ss:$16 sps:$4 sm:$0xff]   ;;  %v1418_v22 = vld [vmem:[#allocation6 + $0xac] ss:$16 sps:$4 sm:$0xff]  }
  0x75   : > { %581 = vmatprep.subr.bf16.mxu0 %v1398_v9  ;;  %622 = vmatprep.subr.bf16.mxu1 %v1400_v10  ;;  %v1420_v23 = vld [vmem:[#allocation6 + $0xa0] ss:$16 sps:$4 sm:$0xff]   ;;  %v1421_v24 = vld [vmem:[#allocation6 + $0xa8] ss:$16 sps:$4 sm:$0xff]   ;;  %v1422_v25 = vld [vmem:[#allocation6 + $0xc4] ss:$16 sps:$4 sm:$0xff]  }
  0x76   : > { %v1424_v26 = vld [vmem:[#allocation6 + $0xcc] ss:$16 sps:$4 sm:$0xff]   ;;  %v1426_v27 = vld [vmem:[#allocation6 + $0xc0] ss:$16 sps:$4 sm:$0xff]   ;;  %v1427_v28 = vld [vmem:[#allocation6 + $0xc8] ss:$16 sps:$4 sm:$0xff]  }
  0x77   : > { %v1428_v29 = vld [vmem:[#allocation6 + $0xe4] ss:$16 sps:$4 sm:$0xff]   ;;  %v1430_v30 = vld [vmem:[#allocation6 + $0xec] ss:$16 sps:$4 sm:$0xff]   ;;  %v1432_v31 = vld [vmem:[#allocation6 + $0xe0] ss:$16 sps:$4 sm:$0xff]  }
  0x78   : > { %582 = vmatpush1.bf16.msra.mxu0 %v1402_v11  ;;  %623 = vmatpush1.bf16.msra.mxu1 %v1403_v12  ;;  %v1433_v32 = vld [vmem:[#allocation6 + $0xe8] ss:$16 sps:$4 sm:$0xff]   ;;  %v1434_v35 = vld [vmem:[#allocation8 + $0x40] sm:$0xff]   ;;  %v1442_v43 = vld [vmem:[#allocation8 + $0x50] sm:$0xff]   ;;  %v398_v4 = vshrl.u32 %v397_v3, 7  ;;  %s1250_s6 = sshll.u32 %s1646_s21, 7 }
  0x79   : > { %583 = vmatprep.subr.bf16.mxu0 %v1404_v13  ;;  %624 = vmatprep.subr.bf16.mxu1 %v1406_v14  ;;  %v394_v33 = vld [vmem:[%s1887_s7] sm:$0xff]  ;;  %v1435_v36 = vld [vmem:[#allocation8 + $0xc0] sm:$0xff]   ;;  %v1439_v40 = vld [vmem:[#allocation8 + $0xc8] sm:$0xff]   ;;  %s280_s9 = scalar_lea.vmem [#allocation9], %s1180_s16  ;;  %s1942_s8 = scalar_lea.hbm %s1996_s5, %s1250_s6 }
  0x7a   : > { %v395_v34 = vpack.c.bf16 %v394_v33, %v394_v33  ;;  %v1436_v37 = vld [vmem:[#allocation8] sm:$0xff]   ;;  %v1440_v41 = vld [vmem:[#allocation8 + $0x8] sm:$0xff]   ;;  %v1443_v44 = vld [vmem:[#allocation8 + $0xd0] sm:$0xff]   ;;  %v399_v5 = vsub.s32 0, %v398_v4  ;;  %v407_v6 = vsub.s32 2, %v398_v4  ;;  %v403_v8 = vsub.s32 1, %v398_v4 }
  0x7b   : > { %v1437_v38 = vld [vmem:[#allocation8 + $0x80] sm:$0xff]   ;;  %v1441_v42 = vld [vmem:[#allocation8 + $0x88] sm:$0xff]   ;;  %v1444_v45 = vld [vmem:[#allocation8 + $0x10] sm:$0xff]   ;;  %v411_v9 = vsub.s32 3, %v398_v4  ;;  %s1069_s11 = sshll.u32 %s280_s9, 4  ;;  %s1056_s10 = scalar_lea.sflag [#allocation5], %s1881_s13  ;;  %s1944_s11 = int_to_ptr.vmem [resolvable:$true] %s1069_s11 }
  0x7c   : > { %584 = vmatpush1.bf16.msra.mxu0 %v1408_v15  ;;  %625 = vmatpush1.bf16.msra.mxu1 %v1409_v16  ;;  %v1445_v46 = vld [vmem:[#allocation8 + $0x90] sm:$0xff]   ;;  %v1446_v47 = vld [vmem:[#allocation8 + $0x58] sm:$0xff]   ;;  %v1450_v51 = vld [vmem:[#allocation8 + $0x60] sm:$0xff]   ;;  %s1568_s24 = scalar_lea.vmem %s1944_s11, 128  ;;  %p2011_p12 = scmp.ne.s32.totalorder %s2007_s14, 0 }
  0x7d   : > { %585 = vmatprep.subr.bf16.mxu0 %v1410_v17  ;;  %626 = vmatprep.subr.bf16.mxu1 %v1412_v18  ;;  %v1447_v48 = vld [vmem:[#allocation8 + $0xd8] sm:$0xff]   ;;  %v1451_v52 = vld [vmem:[#allocation8 + $0xe0] sm:$0xff]   ;;  %v1454_v55 = vld [vmem:[#allocation8 + $0x68] sm:$0xff]   ;;  %p1569_p8 = scmp.ne.s32.totalorder %s1944_s11, %s1568_s24  ;;  %s1665_s21 = smov [#allocation9]  }
  0x7e   : > { %v1448_v49 = vld [vmem:[#allocation8 + $0x18] sm:$0xff]   ;;  %v1452_v53 = vld [vmem:[#allocation8 + $0x20] sm:$0xff]   ;;  %v1455_v56 = vld [vmem:[#allocation8 + $0xe8] sm:$0xff]   ;;  %s1572_s16 = sshll.u32 %s1665_s21, 4  ;;  %s1573_s16 = int_to_ptr.vmem [resolvable:$false] %s1572_s16 }
  0x7f   : > { %v1449_v50 = vld [vmem:[#allocation8 + $0x98] sm:$0xff]   ;;  %v1453_v54 = vld [vmem:[#allocation8 + $0xa0] sm:$0xff]   ;;  %v1456_v57 = vld [vmem:[#allocation8 + $0x28] sm:$0xff]   ;;  %p1570_p1 = pnand %p1569_p8, %p2011_p12  ;;  %s1574_s7 = scalar_lea.vmem %s1573_s16, 256 }
  0x80   : > { %586 = vmatpush1.bf16.msra.mxu0 %v1414_v19  ;;  %627 = vmatpush1.bf16.msra.mxu1 %v1415_v20  ;;  %v1457_v58 = vld [vmem:[#allocation8 + $0xa8] sm:$0xff]   ;;  %v1458_v59 = vld [vmem:[#allocation8 + $0x70] sm:$0xff]   ;;  %v1462_v63 = vld [vmem:[#allocation8 + $0x78] sm:$0xff]   ;;  %p1575_p3 = scmp.lt.s32.totalorder %s1944_s11, %s1573_s16  ;;  %p1576_p5 = scmp.lt.s32.totalorder %s1574_s7, %s1568_s24 }
  0x81   : > { %587 = vmatprep.subr.bf16.mxu0 %v1416_v21  ;;  %628 = vmatprep.subr.bf16.mxu1 %v1418_v22  ;;  %v1459_v60 = vld [vmem:[#allocation8 + $0xf0] sm:$0xff]   ;;  %v1463_v0 = vld [vmem:[#allocation8 + $0xf8] sm:$0xff]   ;;  %p1571_p10 = pneg %p1570_p1 }
  0x82   : > { %v1460_v61 = vld [vmem:[#allocation8 + $0x30] sm:$0xff]   ;;  %v1464_v1 = vld [vmem:[#allocation8 + $0x38] sm:$0xff]   ;;  %p1577_p9 = por %p1576_p5, %p1575_p3 }
  0x83   : > { %v1461_v62 = vld [vmem:[#allocation8 + $0xb0] sm:$0xff]   ;;  %v1465_v2 = vld [vmem:[#allocation8 + $0xb8] sm:$0xff]  }
  0x84   : > { %588 = vmatpush1.bf16.msra.mxu0 %v1420_v23  ;;  %629 = vmatpush1.bf16.msra.mxu1 %v1421_v24  ;;  %v325_v7 = vld [vmem:[%s1993_s2] sm:$0xf]  ;;  %p1578_p11 = pnand %p1577_p9, %p1571_p10 }
  0x85   : > { %589 = vmatprep.subr.bf16.mxu0 %v1422_v25  ;;  %630 = vmatprep.subr.bf16.mxu1 %v1424_v26  ;;  %v400_v10 = vrot.slane %v325_v7, %v399_v5  ;;  %v408_v11 = vrot.slane %v325_v7, %v407_v6  ;;  %v404_v12 = vrot.slane %v325_v7, %v403_v8 }
  0x86   : > { %v412_v13 = vrot.slane %v325_v7, %v411_v9 }
  0x88   : > { %590 = vmatpush1.bf16.msra.mxu0 %v1426_v27  ;;  %631 = vmatpush1.bf16.msra.mxu1 %v1427_v28 }
  0x89   : > { %591 = vmatprep.subr.bf16.mxu0 %v1428_v29  ;;  %632 = vmatprep.subr.bf16.mxu1 %v1430_v30 }
  0x8c   : > { %592 = vmatpush1.bf16.msra.mxu0 %v1432_v31  ;;  %633 = vmatpush1.bf16.msra.mxu1 %v1433_v32 }
  0x8d   : > { %1253 = vmatprep.subr.bf16.mxu0 %v1434_v35  ;;  %1275 = vmatprep.subr.bf16.mxu1 %v1435_v36 }
  0x8f   : > { %610 = vmatmul.mubr.bf16.vlgmr.msra.gmra.mrb[0].mxu0 %v395_v34  ;;  %651 = vmatmul.mubr.bf16.vlgmr.msra.gmra.mrb[0].mxu1 %v395_v34 }
  0x90   : > { %1254 = vmatpush3.bf16.msra.mxu0 %v1436_v37  ;;  %1276 = vmatpush3.bf16.msra.mxu1 %v1437_v38 }
  0x91   : > { %1255 = vmatprep.subr.bf16.mxu0 %v1438_v39  ;;  %1277 = vmatprep.subr.bf16.mxu1 %v1439_v40 }
  0x94   : > { %1256 = vmatpush3.bf16.msra.mxu0 %v1440_v41  ;;  %1278 = vmatpush3.bf16.msra.mxu1 %v1441_v42 }
  0x95   : > { %1257 = vmatprep.subr.bf16.mxu0 %v1442_v43  ;;  %1279 = vmatprep.subr.bf16.mxu1 %v1443_v44 }
  0x98   : > { %1258 = vmatpush3.bf16.msra.mxu0 %v1444_v45  ;;  %1280 = vmatpush3.bf16.msra.mxu1 %v1445_v46 }
  0x99   : > { %1259 = vmatprep.subr.bf16.mxu0 %v1446_v47  ;;  %1281 = vmatprep.subr.bf16.mxu1 %v1447_v48 }
  0x9c   : > { %1260 = vmatpush3.bf16.msra.mxu0 %v1448_v49  ;;  %1282 = vmatpush3.bf16.msra.mxu1 %v1449_v50 }
  0x9d   : > { %1261 = vmatprep.subr.bf16.mxu0 %v1450_v51  ;;  %1283 = vmatprep.subr.bf16.mxu1 %v1451_v52 }
  0xa0   : > { %1262 = vmatpush3.bf16.msra.mxu0 %v1452_v53  ;;  %1284 = vmatpush3.bf16.msra.mxu1 %v1453_v54 }
  0xa1   : > { %1263 = vmatprep.subr.bf16.mxu0 %v1454_v55  ;;  %1285 = vmatprep.subr.bf16.mxu1 %v1455_v56 }
  0xa4   : > { %1264 = vmatpush3.bf16.msra.mxu0 %v1456_v57  ;;  %1286 = vmatpush3.bf16.msra.mxu1 %v1457_v58 }
  0xa5   : > { %1265 = vmatprep.subr.bf16.mxu0 %v1458_v59  ;;  %1287 = vmatprep.subr.bf16.mxu1 %v1459_v60 }
  0xa8   : > { %1266 = vmatpush3.bf16.msra.mxu0 %v1460_v61  ;;  %1288 = vmatpush3.bf16.msra.mxu1 %v1461_v62 }
  0xa9   : > { %1267 = vmatprep.subr.bf16.mxu0 %v1462_v63  ;;  %1289 = vmatprep.subr.bf16.mxu1 %v1463_v0 }
  0xac   : > { %1268 = vmatpush3.bf16.msra.mxu0 %v1464_v1  ;;  %1290 = vmatpush3.bf16.msra.mxu1 %v1465_v2 }
 0x162   : > { %v611_v14 = vpop.f32.mrb[0].mxu0  ;;  %v652_v15 = vpop.f32.mrb[0].mxu1 }
 0x163   : > { %v1901_v16 = vadd.f32 %v611_v14, %v400_v10  ;;  %v1903_v17 = vadd.f32 %v652_v15, %v408_v11  ;;  %v613_v18 = vpop.f32.mrb[1].mxu0  ;;  %v654_v19 = vpop.f32.mrb[1].mxu1 }
 0x164   : > { %v1905_v20 = vadd.f32 %v613_v18, %v404_v12  ;;  %v1907_v21 = vadd.f32 %v654_v19, %v412_v13  ;;  %v615_v22 = vpop.f32.mrb[2].mxu0  ;;  %v656_v23 = vpop.f32.mrb[2].mxu1 }
 0x165   : > { %v1910_v24 = vmul.f32 0.70710677, %v1901_v16  ;;  %v1913_v25 = vmul.f32 0.70710677, %v1903_v17  ;;  %v616_v31 = vpop.f32.mrb[3].mxu0  ;;  %v657_v35 = vpop.f32.mrb[3].mxu1 }
 0x166   : > { %v1916_v26 = vmul.f32 0.70710677, %v1905_v20  ;;  %v1922_v30 = vmul.f32 0.70710677, %v1907_v21 }
 0x167   : > { %v675_v27 = vand.u32 2147483647, %v1910_v24  ;;  %v677_v28 = vand.u32 2147483647, %v1913_v25  ;;  %vm667_vm0 = vcmp.lt.f32.partialorder %v1910_v24, 0.0  ;;  %vm669_vm1 = vcmp.lt.f32.partialorder %v1913_v25, 0.0 }
 0x168   : > { %v676_v29 = vand.u32 2147483647, %v1916_v26  ;;  %v678_v38 = vand.u32 2147483647, %v1922_v30  ;;  %vm668_vm2 = vcmp.lt.f32.partialorder %v1916_v26, 0.0  ;;  %vm670_vm3 = vcmp.lt.f32.partialorder %v1922_v30, 0.0 }
 0x169   : > { %v679_v32 = vmul.f32 0.3275911, %v675_v27  ;;  %v681_v33 = vmul.f32 0.3275911, %v677_v28  ;;  %v727_v42 = vsub.f32 0.0, %v675_v27  ;;  %v729_v43 = vsub.f32 0.0, %v677_v28 }
 0x16a   : > { %v680_v34 = vmul.f32 0.3275911, %v676_v29  ;;  %v682_v40 = vmul.f32 0.3275911, %v678_v38  ;;  %v728_v46 = vsub.f32 0.0, %v676_v29  ;;  %v730_v51 = vsub.f32 0.0, %v678_v38 }
 0x16b   : > { %v683_v36 = vadd.f32 1.0, %v679_v32  ;;  %v685_v37 = vadd.f32 1.0, %v681_v33  ;;  %v731_v45 = vmul.f32 %v727_v42, %v675_v27  ;;  %v733_v49 = vmul.f32 %v729_v43, %v677_v28 }
 0x16c   : > { %v684_v39 = vadd.f32 1.0, %v680_v34  ;;  %v686_v41 = vadd.f32 1.0, %v682_v40  ;;  %v732_v56 = vmul.f32 %v728_v46, %v676_v29  ;;  %v734_v62 = vmul.f32 %v730_v51, %v678_v38 }
 0x16d   : > { %1466 = vrcp.f32 %v683_v36  ;;  %v735_v54 = vmul.f32 1.442695, %v731_v45  ;;  %v739_v58 = vmul.f32 1.442695, %v733_v49  ;;  %v1664_v43 = vmov 1.0  }
 0x16e   : > { %1468 = vrcp.f32 %v685_v37  ;;  %v737_v3 = vmul.f32 1.442695, %v732_v56  ;;  %v741_v8 = vmul.f32 1.442695, %v734_v62  ;;  %v671_v45 = vsel %vm667_vm0, -1.0, %v1664_v43 }
 0x16f   : > { %1470 = vrcp.f32 %v684_v39  ;;  %v659_v56 = vmul.f32 0.5, %v1901_v16 }
 0x170   : > { %1472 = vrcp.f32 %v686_v41 }
 0x171   : > { %1474 = vpow2.f32 %v735_v54  ;;  %v672_v54 = vsel %vm668_vm2, -1.0, %v1664_v43 }
 0x172   : > { %1476 = vpow2.f32 %v739_v58  ;;  %v674_v58 = vsel %vm670_vm3, -1.0, %v1664_v43 }
 0x173   : > { %1478 = vpow2.f32 %v737_v3 }
 0x174   : > { %1480 = vpow2.f32 %v741_v8 }
 0x177   : > { %v1467_v44 = vpop.eup %1466 }
 0x178   : > { %v1469_v47 = vpop.eup %1468  ;;  %v691_v48 = vmul.f32 1.0614054, %v1467_v44 }
 0x179   : > { %v693_v50 = vmul.f32 1.0614054, %v1469_v47  ;;  %v1471_v53 = vpop.eup %1470 }
 0x17a   : > { %v695_v52 = vadd.f32 -1.4531521, %v691_v48  ;;  %v692_v59 = vmul.f32 1.0614054, %v1471_v53  ;;  %v1473_v60 = vpop.eup %1472 }
 0x17b   : > { %v697_v55 = vadd.f32 -1.4531521, %v693_v50  ;;  %v694_v1 = vmul.f32 1.0614054, %v1473_v60  ;;  %v1475_v32 = vpop.eup %1474 }
 0x17c   : > { %v699_v57 = vmul.f32 %v1467_v44, %v695_v52  ;;  %v696_v0 = vadd.f32 -1.4531521, %v692_v59  ;;  %v1477_v34 = vpop.eup %1476  ;;  %v660_v59 = vmul.f32 0.5, %v1905_v20 }
 0x17d   : > { %v701_v61 = vmul.f32 %v1469_v47, %v697_v55  ;;  %v698_v6 = vadd.f32 -1.4531521, %v694_v1  ;;  %v1479_v42 = vpop.eup %1478 }
 0x17e   : > { %v703_v63 = vadd.f32 1.4214138, %v699_v57  ;;  %v700_v5 = vmul.f32 %v1471_v53, %v696_v0  ;;  %v1481_v49 = vpop.eup %1480 }
 0x17f   : > { %v705_v2 = vadd.f32 1.4214138, %v701_v61  ;;  %v702_v11 = vmul.f32 %v1473_v60, %v698_v6 }
 0x180   : > { %v707_v4 = vmul.f32 %v1467_v44, %v703_v63  ;;  %v704_v10 = vadd.f32 1.4214138, %v700_v5  ;;  %v662_v63 = vmul.f32 0.5, %v1907_v21 }
 0x181   : > { %v709_v7 = vmul.f32 %v1469_v47, %v705_v2  ;;  %v706_v15 = vadd.f32 1.4214138, %v702_v11 }
 0x182   : > { %v711_v9 = vadd.f32 -0.28449672, %v707_v4  ;;  %v708_v14 = vmul.f32 %v1471_v53, %v704_v10 }
 0x183   : > { %v713_v12 = vadd.f32 -0.28449672, %v709_v7  ;;  %v710_v23 = vmul.f32 %v1473_v60, %v706_v15 }
 0x184   : > { %v715_v13 = vmul.f32 %v1467_v44, %v711_v9  ;;  %v712_v22 = vadd.f32 -0.28449672, %v708_v14 }
 0x185   : > { %v717_v18 = vmul.f32 %v1469_v47, %v713_v12  ;;  %v714_v31 = vadd.f32 -0.28449672, %v710_v23  ;;  %v1248_v12 = vld [vmem:[%s1995_s4] ss:$0 sm:$0xff] }
 0x186   : > { %v719_v19 = vadd.f32 0.2548296, %v715_v13  ;;  %v716_v29 = vmul.f32 %v1471_v53, %v712_v22 }
 0x187   : > { %v721_v27 = vadd.f32 0.2548296, %v717_v18  ;;  %v718_v37 = vmul.f32 %v1473_v60, %v714_v31 }
 0x188   : > { %v723_v28 = vmul.f32 %v1467_v44, %v719_v19  ;;  %v720_v36 = vadd.f32 0.2548296, %v716_v29  ;;  %v673_v44 = vsel %vm669_vm1, -1.0, %v1664_v43 }
 0x189   : > { %v725_v33 = vmul.f32 %v1469_v47, %v721_v27  ;;  %v722_v41 = vadd.f32 0.2548296, %v718_v37 }
 0x18a   : > { %v743_v35 = vmul.f32 %v1475_v32, %v723_v28  ;;  %v724_v40 = vmul.f32 %v1471_v53, %v720_v36 }
 0x18b   : > { %v745_v38 = vmul.f32 %v1477_v34, %v725_v33  ;;  %v726_v47 = vmul.f32 %v1473_v60, %v722_v41  ;;  %v661_v60 = vmul.f32 0.5, %v1903_v17 }
 0x18c   : > { %v747_v39 = vsub.f32 1.0, %v743_v35  ;;  %v744_v24 = vmul.f32 %v1479_v42, %v724_v40 }
 0x18d   : > { %v749_v46 = vsub.f32 1.0, %v745_v38  ;;  %v746_v25 = vmul.f32 %v1481_v49, %v726_v47 }
 0x18e   : > { %v751_v48 = vmul.f32 %v747_v39, %v671_v45  ;;  %v748_v51 = vsub.f32 1.0, %v744_v24 }
 0x18f   : > { %v753_v50 = vmul.f32 %v749_v46, %v673_v44  ;;  %v750_v55 = vsub.f32 1.0, %v746_v25 }
 0x190   : > { %v755_v52 = vadd.f32 1.0, %v751_v48  ;;  %v752_v53 = vmul.f32 %v748_v51, %v672_v54 }
 0x191   : > { %v757_v57 = vadd.f32 1.0, %v753_v50  ;;  %v754_v61 = vmul.f32 %v750_v55, %v674_v58 }
 0x192   : > { %v756_v26 = vadd.f32 1.0, %v752_v53  ;;  %v759_v62 = vmul.f32 %v755_v52, %v659_v56 }
 0x193   : > { %v758_v30 = vadd.f32 1.0, %v754_v61  ;;  %v761_v1 = vmul.f32 %v757_v57, %v661_v60 }
 0x194   : > { %v760_v0 = vmul.f32 %v756_v26, %v660_v59  ;;  %v764_v4 = vpack.c.bf16 %v759_v62, %v759_v62 }
 0x195   : > { %v762_v3 = vmul.f32 %v758_v30, %v662_v63  ;;  %v766_v16 = vpack.c.bf16 %v761_v1, %v761_v1 }
 0x196   : > { %v765_v2 = vpack.c.bf16 %v760_v0, %v760_v0 }
 0x197   : > { %v767_v5 = vpack.c.bf16 %v762_v3, %v762_v3 }
 0x198   : > { %992 = vmatprep.mubr.bf16.mxu0 %v765_v2 }
 0x199   : > { %993 = vmatmul.mubr.bf16.vlgmr.msra.gmra.mrb[4].mxu0 %v764_v4  ;;  %1032 = vmatprep.mubr.bf16.mxu1 %v767_v5 }
 0x19a   : > { %1033 = vmatmul.mubr.bf16.vlgmr.msra.gmra.mrb[4].mxu1 %v766_v16 }
 0x26c   : > { %v1269_v20 = vpop.f32.mrb[4].mxu0 }
 0x26d   : > { %v1270_v6 = vpop.f32.mrb[5].mxu0  ;;  %v1291_v7 = vpop.f32.mrb[4].mxu1 }
 0x26e   : > { %v1271_v17 = vadd.f32 %v1270_v6, %v1269_v20  ;;  %v1272_v21 = vpop.f32.mrb[6].mxu0  ;;  %v1292_v8 = vpop.f32.mrb[5].mxu1 }
 0x26f   : > { %v1273_v9 = vpop.f32.mrb[7].mxu0  ;;  %v1293_v10 = vadd.f32 %v1292_v8, %v1291_v7  ;;  %v1294_v11 = vpop.f32.mrb[6].mxu1 }
 0x270   : > { %v1295_v13 = vpop.f32.mrb[7].mxu1 }
 0x271   : > { %v1035_v14 = vadd.f32 %v1293_v10, %v1271_v17 }
 0x273   : > { %v1053_v15 = vadd.f32 %v1248_v12, %v1035_v14 }
 0x275   : > { %1054 = vst [vmem:[%s280_s9] sm:$0xff] %v1053_v15 }
 0x276   : > { %1581 = shalt.err (!%p1578_p11)
}
 0x277   : > { %s1582_s13 = scalar_lea.hbm %s1942_s8, 128  ;;  %s1586_s30 = scalar_lea.hbm %s1996_s5, 256 }
 0x278   : > { %p1583_p0 = scmp.ne.s32.totalorder %s1942_s8, %s1582_s13  ;;  %p1587_p6 = scmp.lt.u32.totalorder %s1942_s8, %s1996_s5 }
 0x279   : > { %p1588_p7 = scmp.lt.u32.totalorder %s1586_s30, %s1582_s13  ;;  %p1590_p8 = scmp.lt.u32.totalorder %s1582_s13, %s1942_s8 }
 0x27a   : > { %p1584_p4 = pnand %p1583_p0, %p2011_p12 }
 0x27b   : > { %p1589_p2 = por %p1588_p7, %p1587_p6 }
 0x27c   : > { %p1585_p13 = pneg %p1584_p4 }
 0x27d   : > { %p1591_p1 = por %p1590_p8, %p1589_p2 }
 0x27f   : > { %p1592_p10 = pnand %p1591_p1, %p1585_p13 }
 0x281   : > { %1595 = shalt.err (!%p1592_p10)
}
 0x282   : > { %1307 = dma.vmem_to_hbm [thread:$0]  (%p2011_p12), %s1944_s11, 128, %s1942_s8, %s1056_s10  }
 0x283 PF: > { %s1081_s9 = sand.u32 1, %s1634_s18   ;;  %p2012_p3 = scmp.ne.s32.totalorder %s2004_s29, 0 }
 0x284   : > { %p2013_p5 = scmp.ge.s32.totalorder %s1654_s23, 2  ;;  %s1082_s15 = scalar_lea.sflag [#allocation5], %s1081_s9 }
 0x286   : > { %p1321_p9 = pnand %p2013_p5, %p2012_p3 }
 0x288   : > { %1629 = dma.done.wait (!%p1321_p9), %s1082_s15, 128  }
 0x289   : > { %1631 = vsyncadd (!%p1321_p9), %s1082_s15, 4294967168  ;;  %s22_s23 = sadd.s32 1, %s1654_s23   ;;  %s2014_s18 = smov %s1638_s19 }
 0x28a   : > { %p19_p11 = scmp.ge.s32.totalorder %s22_s23, 4   ;;  %s2015_s19 = smov %s1642_s20 }
 0x28b   : > { %s2016_s20 = smov %s1838_s17  ;;  %s2017_s21 = smov %s1650_s22 }
 0x28c   : > { %s2018_s22 = smov %s2020_s12  ;;  %21 = sbr.rel (!%p19_p11) target bundleno = 7 (0x7), region = 104 }
 0x293   :  { %1087 = vsyncpa [#allocation4], 1 }
 0x294   :  { %1089 = vsyncpa [#allocation4 + $0x1], 1 }
 0x295   :  { %1090 = vsyncpa [#allocation7], 1 }
 0x296   :  { %1091 = vsyncpa [#allocation5], 1 }
 0x297   :  { %1093 = vsyncpa [#allocation5 + $0x1], 1 }

</bundles_post_ra>
